<compile_context>
chip_gen: v5e
topology: v5e:2x2
jax: 0.10.0
libtpu: 0.0.40
codegen_flags: <defaults>
</compile_context>

<pallas_src>
import jax
import jax.numpy as jnp
from jax.experimental import pallas as pl
from jax.experimental.pallas import tpu as pltpu


# ----------------------------- kernel ----------------------------------------

def _make_fused_mlp_kernel(num_hidden):
    """Fused MLP kernel, feature-major layout (batch on lanes).

    Ref layout (positional):
      refs[0]                  : x tile                    (input_size, TM)
      refs[1 + 2*i]            : folded W, hidden layer i  (hidden_i, prev_i)
      refs[2 + 2*i]            : shift,  hidden layer i    (hidden_i, 1)
      refs[1 + 2*num_hidden]   : output W                  (out_size, prev_last)
      refs[2 + 2*num_hidden]   : output bias               (out_size, 1)
      refs[-1]                 : output tile               (out_size, TM)
    """

    def kernel(*refs):
        x_ref = refs[0]
        o_ref = refs[-1]
        p = refs[1:-1]

        h = x_ref[...]                                  # (prev, TM), lane-dense
        for i in range(num_hidden):
            w_ref = p[2 * i]                            # (hidden, prev), BN scale folded
            shift_ref = p[2 * i + 1]                    # (hidden, 1)  Linear bias + BN shift
            z = jnp.dot(w_ref[...], h,
                        preferred_element_type=jnp.float32)   # (hidden, TM)
            z = z + shift_ref[...]
            h = jnp.maximum(z, 0.2 * z)                 # LeakyReLU(0.2)

        w_out_ref = p[2 * num_hidden]                   # (out_size, prev)
        b_out_ref = p[2 * num_hidden + 1]               # (out_size, 1)
        z_out = jnp.dot(w_out_ref[...], h,
                        preferred_element_type=jnp.float32)   # (out_size, TM)
        o_ref[...] = (z_out + b_out_ref[...]).astype(o_ref.dtype)

    return kernel


# ----------------------------- wrapper ----------------------------------------

def ann_flowfield_forward(params, x, tm=1024):
    """x: (batch, input_size) float32 -> (batch, output_size) float32.

    tm: batch row-tile size (rounded up to a multiple of 128).  For v5e/v6e
    (1 TensorCore) one tile covering the whole batch is best; on v7x keep
    >= 2 tiles so the 'parallel' axis shards across both TensorCores.
    """
    batch, input_size = x.shape
    num_hidden = len(params["hidden"])
    out_size = params["out"]["w"].shape[0]

    tm = max(128, ((tm + 127) // 128) * 128)
    num_tiles = pl.cdiv(batch, tm)
    padded = num_tiles * tm

    # Feature-major input: one transpose(+pad, only if ragged) pass in the
    # wrapper; inside the kernel everything is lane-dense.
    if padded != batch:
        x_t = jnp.pad(x, ((0, padded - batch), (0, 0))).T   # (input_size, padded)
    else:
        x_t = x.T

    def resident(shape):
        # Same block every grid step -> stays resident in VMEM.
        return pl.BlockSpec(shape, lambda i: (0, 0))

    flat_inputs = [x_t]
    in_specs = [pl.BlockSpec((input_size, tm), lambda i: (0, i))]
    for layer in params["hidden"]:
        flat_inputs += [layer["w_fold"], layer["shift"]]
        in_specs += [resident(layer["w_fold"].shape),
                     resident(layer["shift"].shape)]
    flat_inputs += [params["out"]["w"], params["out"]["b"]]
    in_specs += [resident(params["out"]["w"].shape),
                 resident(params["out"]["b"].shape)]

    out_slab = pl.pallas_call(
        _make_fused_mlp_kernel(num_hidden),
        out_shape=jax.ShapeDtypeStruct((out_size, padded), jnp.float32),
        grid=(num_tiles,),
        in_specs=in_specs,
        # Lane-dense output blocks: last dim = tm (multiple of 128),
        # second-to-last = out_size = full array dim.
        out_specs=pl.BlockSpec((out_size, tm), lambda i: (0, i)),
        compiler_params=pltpu.CompilerParams(
            dimension_semantics=("parallel",)),
    )(*flat_inputs)

    if out_size == 1:
        # (1, padded) -> (padded, 1) is a free reshape (same element order).
        return out_slab.reshape(padded, 1)[:batch, :]
    return out_slab.T[:batch, :]


# ----------------------------- parameters -------------------------------------

def init_ann_flowfield_params(key, hidden_sizes, hidden_number,
                              input_size=12, output_size=1):
    """Deterministic synthetic parameters matching the PyTorch module shapes.

    Eval-mode BatchNorm is folded host-side:
        s       = gamma / sqrt(running_var + eps)
        W_fold  = W * s[:, None]                  # (hidden, prev), feature-major
        shift   = (b - running_mean) * s + beta   # (hidden, 1)
    so each hidden layer becomes  leaky_relu(W_fold @ h + shift, 0.2).
    Raw parameters are kept for the pure-JAX reference.
    """
    bn_eps = 1e-5
    sizes = [hidden_sizes] * hidden_number
    params = {"hidden": [], "out": None}
    prev = input_size
    for h in sizes:
        key, kw, kb, kg, kbeta, km, kv = jax.random.split(key, 7)
        bound = prev ** -0.5
        w = jax.random.uniform(kw, (h, prev), jnp.float32, -bound, bound)  # (out, in)
        b = jax.random.uniform(kb, (h,), jnp.float32, -bound, bound)
        gamma = 1.0 + 0.1 * jax.random.normal(kg, (h,), jnp.float32)
        beta = 0.1 * jax.random.normal(kbeta, (h,), jnp.float32)
        mean = 0.1 * jax.random.normal(km, (h,), jnp.float32)
        var = 1.0 + 0.1 * jax.random.uniform(kv, (h,), jnp.float32)

        s = gamma / jnp.sqrt(var + bn_eps)
        w_fold = w * s[:, None]                          # (h, prev)
        shift = ((b - mean) * s + beta).reshape(h, 1)    # (h, 1)

        params["hidden"].append({
            "w_fold": w_fold,
            "shift": shift,
            "raw": {"w": w, "b": b, "gamma": gamma, "beta": beta,
                    "mean": mean, "var": var},
        })
        prev = h

    key, kw, kb = jax.random.split(key, 3)
    bound = prev ** -0.5
    w_out = jax.random.uniform(kw, (output_size, prev), jnp.float32, -bound, bound)
    b_out = jax.random.uniform(kb, (output_size,), jnp.float32, -bound, bound)
    params["out"] = {"w": w_out, "b": b_out.reshape(output_size, 1)}
    return params


# ----------------------------- reference --------------------------------------

def ann_flowfield_reference(params, x):
    """Pure-JAX eval-mode forward using the *unfolded* raw parameters."""
    hi = jax.lax.Precision.HIGHEST
    bn_eps = 1e-5
    for layer in params["hidden"]:
        r = layer["raw"]
        z = jnp.dot(x, r["w"].T, precision=hi) + r["b"]
        z = r["gamma"] * (z - r["mean"]) / jnp.sqrt(r["var"] + bn_eps) + r["beta"]
        x = jnp.where(z >= 0.0, z, 0.2 * z)
    w_out, b_out = params["out"]["w"], params["out"]["b"]
    return jnp.dot(x, w_out.T, precision=hi) + b_out.T


# ----------------------------- main --------------------------------------------

if __name__ == "__main__":
    key = jax.random.PRNGKey(0)
    batch = 200            # not a multiple of 128 -> exercises the padding path
    input_size = 12
    hidden_sizes = 32
    hidden_number = 3
    output_size = 1

    kp, kx = jax.random.split(key)
    params = init_ann_flowfield_params(kp, hidden_sizes, hidden_number,
                                       input_size=input_size,
                                       output_size=output_size)
    x = jax.random.normal(kx, (batch, input_size), jnp.float32)

    ref = ann_flowfield_reference(params, x)

    # Config 1: single tile covering the padded batch (best for v5e/v6e).
    fwd_1tile = jax.jit(lambda p, xx: ann_flowfield_forward(p, xx, tm=256))
    out1 = jax.block_until_ready(fwd_1tile(params, x))
    assert out1.shape == (batch, output_size)
    err1 = float(jnp.max(jnp.abs(out1 - ref)))
    assert jnp.allclose(out1, ref, atol=1e-4, rtol=1e-4), err1

    # Config 2: two tiles (exercises the multi-step parallel grid + padding).
    fwd_2tile = jax.jit(lambda p, xx: ann_flowfield_forward(p, xx, tm=128))
    out2 = jax.block_until_ready(fwd_2tile(params, x))
    assert out2.shape == (batch, output_size)
    err2 = float(jnp.max(jnp.abs(out2 - ref)))
    assert jnp.allclose(out2, ref, atol=1e-4, rtol=1e-4), err2

    print("KERNEL_OK")
</pallas_src>

<mosaic_0001>
module attributes {stable_mosaic.version = 11 : i64} {
  func.func @kernel(%arg0: i32, %arg1: memref<12x256xf32, #tpu.memory_space<vmem>>, %arg2: memref<32x12xf32, #tpu.memory_space<vmem>>, %arg3: memref<32x1xf32, #tpu.memory_space<vmem>>, %arg4: memref<32x32xf32, #tpu.memory_space<vmem>>, %arg5: memref<32x1xf32, #tpu.memory_space<vmem>>, %arg6: memref<32x32xf32, #tpu.memory_space<vmem>>, %arg7: memref<32x1xf32, #tpu.memory_space<vmem>>, %arg8: memref<1x32xf32, #tpu.memory_space<vmem>>, %arg9: memref<1x1xf32, #tpu.memory_space<vmem>>, %arg10: memref<1x256xf32, #tpu.memory_space<vmem>>) attributes {dimension_semantics = [#tpu.dimension_semantics<parallel>], iteration_bounds = array<i64: 1>, scalar_prefetch = 0 : i64, scratch_operands = 0 : i64, tpu.core_type = #tpu.core_type<tc>, window_params = [{transform_indices = @transform_0, window_bounds = array<i64: 12, 256>}, {pipeline_mode = #tpu.pipeline_mode<synchronous>, transform_indices = @transform_1, window_bounds = array<i64: 32, 12>}, {pipeline_mode = #tpu.pipeline_mode<synchronous>, transform_indices = @transform_2, window_bounds = array<i64: 32, 1>}, {pipeline_mode = #tpu.pipeline_mode<synchronous>, transform_indices = @transform_3, window_bounds = array<i64: 32, 32>}, {pipeline_mode = #tpu.pipeline_mode<synchronous>, transform_indices = @transform_4, window_bounds = array<i64: 32, 1>}, {pipeline_mode = #tpu.pipeline_mode<synchronous>, transform_indices = @transform_5, window_bounds = array<i64: 32, 32>}, {pipeline_mode = #tpu.pipeline_mode<synchronous>, transform_indices = @transform_6, window_bounds = array<i64: 32, 1>}, {pipeline_mode = #tpu.pipeline_mode<synchronous>, transform_indices = @transform_7, window_bounds = array<i64: 1, 32>}, {pipeline_mode = #tpu.pipeline_mode<synchronous>, transform_indices = @transform_8, window_bounds = array<i64: 1, 1>}, {transform_indices = @transform_9, window_bounds = array<i64: 1, 256>}]} {
    %c0 = arith.constant 0 : index
    %c0_0 = arith.constant 0 : index
    %0 = vector.load %arg1[%c0, %c0_0] : memref<12x256xf32, #tpu.memory_space<vmem>>, vector<12x256xf32>
    %c0_1 = arith.constant 0 : index
    %c0_2 = arith.constant 0 : index
    %1 = vector.load %arg2[%c0_1, %c0_2] : memref<32x12xf32, #tpu.memory_space<vmem>>, vector<32x12xf32>
    %cst = arith.constant dense<0.000000e+00> : vector<32x256xf32>
    %2 = tpu.matmul %1, %0, %cst {dimension_numbers = #tpu.dot_dimension_numbers<[1], [0], [0], [1], [0, 0, 1, 1], [], []>} : vector<32x12xf32>, vector<12x256xf32>, vector<32x256xf32> -> vector<32x256xf32>
    %c0_3 = arith.constant 0 : index
    %c0_4 = arith.constant 0 : index
    %3 = vector.load %arg3[%c0_3, %c0_4] : memref<32x1xf32, #tpu.memory_space<vmem>>, vector<32x1xf32>
    %4 = vector.broadcast %3 : vector<32x1xf32> to vector<32x256xf32>
    %5 = arith.addf %2, %4 : vector<32x256xf32>
    %cst_5 = arith.constant 2.000000e-01 : f32
    %6 = vector.broadcast %cst_5 : f32 to vector<32x256xf32>
    %7 = arith.mulf %6, %5 : vector<32x256xf32>
    %8 = arith.maximumf %5, %7 : vector<32x256xf32>
    %c0_6 = arith.constant 0 : index
    %c0_7 = arith.constant 0 : index
    %9 = vector.load %arg4[%c0_6, %c0_7] : memref<32x32xf32, #tpu.memory_space<vmem>>, vector<32x32xf32>
    %cst_8 = arith.constant dense<0.000000e+00> : vector<32x256xf32>
    %10 = tpu.matmul %9, %8, %cst_8 {dimension_numbers = #tpu.dot_dimension_numbers<[1], [0], [0], [1], [0, 0, 1, 1], [], []>} : vector<32x32xf32>, vector<32x256xf32>, vector<32x256xf32> -> vector<32x256xf32>
    %c0_9 = arith.constant 0 : index
    %c0_10 = arith.constant 0 : index
    %11 = vector.load %arg5[%c0_9, %c0_10] : memref<32x1xf32, #tpu.memory_space<vmem>>, vector<32x1xf32>
    %12 = vector.broadcast %11 : vector<32x1xf32> to vector<32x256xf32>
    %13 = arith.addf %10, %12 : vector<32x256xf32>
    %cst_11 = arith.constant 2.000000e-01 : f32
    %14 = vector.broadcast %cst_11 : f32 to vector<32x256xf32>
    %15 = arith.mulf %14, %13 : vector<32x256xf32>
    %16 = arith.maximumf %13, %15 : vector<32x256xf32>
    %c0_12 = arith.constant 0 : index
    %c0_13 = arith.constant 0 : index
    %17 = vector.load %arg6[%c0_12, %c0_13] : memref<32x32xf32, #tpu.memory_space<vmem>>, vector<32x32xf32>
    %cst_14 = arith.constant dense<0.000000e+00> : vector<32x256xf32>
    %18 = tpu.matmul %17, %16, %cst_14 {dimension_numbers = #tpu.dot_dimension_numbers<[1], [0], [0], [1], [0, 0, 1, 1], [], []>} : vector<32x32xf32>, vector<32x256xf32>, vector<32x256xf32> -> vector<32x256xf32>
    %c0_15 = arith.constant 0 : index
    %c0_16 = arith.constant 0 : index
    %19 = vector.load %arg7[%c0_15, %c0_16] : memref<32x1xf32, #tpu.memory_space<vmem>>, vector<32x1xf32>
    %20 = vector.broadcast %19 : vector<32x1xf32> to vector<32x256xf32>
    %21 = arith.addf %18, %20 : vector<32x256xf32>
    %cst_17 = arith.constant 2.000000e-01 : f32
    %22 = vector.broadcast %cst_17 : f32 to vector<32x256xf32>
    %23 = arith.mulf %22, %21 : vector<32x256xf32>
    %24 = arith.maximumf %21, %23 : vector<32x256xf32>
    %c0_18 = arith.constant 0 : index
    %c0_19 = arith.constant 0 : index
    %25 = vector.load %arg8[%c0_18, %c0_19] : memref<1x32xf32, #tpu.memory_space<vmem>>, vector<1x32xf32>
    %cst_20 = arith.constant dense<0.000000e+00> : vector<1x256xf32>
    %26 = tpu.matmul %25, %24, %cst_20 {dimension_numbers = #tpu.dot_dimension_numbers<[1], [0], [0], [1], [0, 0, 1, 1], [], []>} : vector<1x32xf32>, vector<32x256xf32>, vector<1x256xf32> -> vector<1x256xf32>
    %c0_21 = arith.constant 0 : index
    %c0_22 = arith.constant 0 : index
    %27 = vector.load %arg9[%c0_21, %c0_22] : memref<1x1xf32, #tpu.memory_space<vmem>>, vector<1x1xf32>
    %28 = vector.broadcast %27 : vector<1x1xf32> to vector<1x256xf32>
    %29 = arith.addf %26, %28 : vector<1x256xf32>
    %c0_23 = arith.constant 0 : index
    %c0_24 = arith.constant 0 : index
    %30 = vector.load %arg10[%c0_23, %c0_24] : memref<1x256xf32, #tpu.memory_space<vmem>>, vector<1x256xf32>
    tpu.vector_store %arg10[%c0_23, %c0_24], %29 {strides = array<i32>} : memref<1x256xf32, #tpu.memory_space<vmem>>, vector<1x256xf32>,
    return
  }
  func.func @transform_0(%arg0: i32) -> (i32, i32) {
    %c0_i32 = arith.constant 0 : i32
    %c0_i32_0 = arith.constant 0 : i32
    return %c0_i32, %arg0 : i32, i32
  }
  func.func @transform_1(%arg0: i32) -> (i32, i32) {
    %c0_i32 = arith.constant 0 : i32
    %c0_i32_0 = arith.constant 0 : i32
    %c0_i32_1 = arith.constant 0 : i32
    return %c0_i32, %c0_i32_0 : i32, i32
  }
  func.func @transform_2(%arg0: i32) -> (i32, i32) {
    %c0_i32 = arith.constant 0 : i32
    %c0_i32_0 = arith.constant 0 : i32
    %c0_i32_1 = arith.constant 0 : i32
    return %c0_i32, %c0_i32_0 : i32, i32
  }
  func.func @transform_3(%arg0: i32) -> (i32, i32) {
    %c0_i32 = arith.constant 0 : i32
    %c0_i32_0 = arith.constant 0 : i32
    %c0_i32_1 = arith.constant 0 : i32
    return %c0_i32, %c0_i32_0 : i32, i32
  }
  func.func @transform_4(%arg0: i32) -> (i32, i32) {
    %c0_i32 = arith.constant 0 : i32
    %c0_i32_0 = arith.constant 0 : i32
    %c0_i32_1 = arith.constant 0 : i32
    return %c0_i32, %c0_i32_0 : i32, i32
  }
  func.func @transform_5(%arg0: i32) -> (i32, i32) {
    %c0_i32 = arith.constant 0 : i32
    %c0_i32_0 = arith.constant 0 : i32
    %c0_i32_1 = arith.constant 0 : i32
    return %c0_i32, %c0_i32_0 : i32, i32
  }
  func.func @transform_6(%arg0: i32) -> (i32, i32) {
    %c0_i32 = arith.constant 0 : i32
    %c0_i32_0 = arith.constant 0 : i32
    %c0_i32_1 = arith.constant 0 : i32
    return %c0_i32, %c0_i32_0 : i32, i32
  }
  func.func @transform_7(%arg0: i32) -> (i32, i32) {
    %c0_i32 = arith.constant 0 : i32
    %c0_i32_0 = arith.constant 0 : i32
    %c0_i32_1 = arith.constant 0 : i32
    return %c0_i32, %c0_i32_0 : i32, i32
  }
  func.func @transform_8(%arg0: i32) -> (i32, i32) {
    %c0_i32 = arith.constant 0 : i32
    %c0_i32_0 = arith.constant 0 : i32
    %c0_i32_1 = arith.constant 0 : i32
    return %c0_i32, %c0_i32_0 : i32, i32
  }
  func.func @transform_9(%arg0: i32) -> (i32, i32) {
    %c0_i32 = arith.constant 0 : i32
    %c0_i32_0 = arith.constant 0 : i32
    return %c0_i32, %arg0 : i32, i32
  }
}

</mosaic_0001>

<bundles_post_ra>
// kernel: _lambda_.1
= control target key start
LH: loop header
LB: loop body
LE: loop exit
PB: predicated region body
PF: predicated region fallthrough
CT: control target
= control target key end

     0   :  { %vm79_vm0 = vcmask 1043456   ;;  %v491_v0 = vmov 0   ;;  %vm66_vm1 = vcmask 97280   ;;  %vm188_vm2 = vcmask 261120   ;;  %s665_s2 = inlined_call_operand.vmem [shape: f32[32,1], index: 2, kind: input, shape index: {}]   ;;  %s666_s0 = inlined_call_operand.vmem [shape: f32[12,256], index: 0, kind: input, shape index: {}]   ;;  %s667_s8 = inlined_call_operand.<no memory space> [shape: f32[1,1], index: 8, kind: input, shape index: {}]   ;;  %s668_s1 = inlined_call_operand.vmem [shape: f32[32,12], index: 1, kind: input, shape index: {}]   ;;  %s669_s4 = inlined_call_operand.vmem [shape: f32[32,1], index: 4, kind: input, shape index: {}]   ;;  %s670_s6 = inlined_call_operand.vmem [shape: f32[32,1], index: 6, kind: input, shape index: {}]   ;;  %s671_s3 = inlined_call_operand.vmem [shape: f32[32,32], index: 3, kind: input, shape index: {}]   ;;  %s672_s5 = inlined_call_operand.vmem [shape: f32[32,32], index: 5, kind: input, shape index: {}]   ;;  %s673_s7 = inlined_call_operand.vmem [shape: f32[1,32], index: 7, kind: input, shape index: {}]   ;;  %s674_s9 = inlined_call_operand.vmem [shape: f32[1,256], index: 9, kind: output, shape index: {}]  }
   0x1   :  { %488 = vset.pattern.permute.xlu0 %v491_v0  ;;  %v45_v1 = vld [vmem:[%s665_s2 + $0x18] sm:$0xff]  ;;  %v36_v2 = vld [vmem:[%s666_s0 + $0x10] sm:$0xf]  ;;  %489 = vset.pattern.permute.xlu1 %v491_v0  ;;  %v14_v4 = vstv %s667_s8  ;;  %v43_v5 = vld [vmem:[%s665_s2 + $0x8] sm:$0xff]  ;;  %vm443_vm3 = vcmask 1040384  }
   0x2   :  { %v37_v3 = vld [vmem:[%s666_s0 + $0x18] sm:$0xf]  ;;  %63 = vperm.xlu0 %488, %v45_v1   ;;  %455 = vmatpush.msk.msra.mxu0 %vm79_vm0, %v36_v2  ;;  %v34_v6 = vld [vmem:[%s666_s0] sm:$0xff]  ;;  %15 = vst [vmem:[#allocation2] sm:$0x1] %v14_v4  ;;  %v35_v7 = vld [vmem:[%s666_s0 + $0x8] sm:$0xff] }
   0x3   :  { %483 = vmatpush.msk.msra.mxu2 %vm79_vm0, %v36_v2  ;;  %460 = vmatpush.msk.msra.mxu1 %vm79_vm0, %v37_v3  ;;  %v38_v8 = vld [vmem:[%s668_s1] sm:$0xff]  ;;  %v41_v9 = vld [vmem:[%s668_s1 + $0x18] sm:$0xff]  ;;  %v44_v10 = vld [vmem:[%s665_s2 + $0x10] sm:$0xff] }
   0x4   :  { %485 = vmatpush.msk.msra.mxu3 %vm79_vm0, %v37_v3  ;;  %53 = vperm.xlu1 %489, %v43_v5   ;;  %v42_v11 = vld [vmem:[%s665_s2] sm:$0xff]  ;;  %v39_v12 = vld [vmem:[%s668_s1 + $0x8] sm:$0xff]  ;;  %v40_v15 = vld [vmem:[%s668_s1 + $0x10] sm:$0xff] }
   0x5   :  { %101 = vmatpush.msra.mxu0 %v34_v6  ;;  %484 = vmatpush.msra.mxu2 %v34_v6  ;;  %v165_v13 = vld [vmem:[%s669_s4 + $0x8] sm:$0xff]  ;;  %v164_v14 = vld [vmem:[%s669_s4] sm:$0xff]  ;;  %v281_v16 = vld [vmem:[%s670_s6 + $0x10] sm:$0xff] }
   0x6   :  { %130 = vmatpush.msra.mxu1 %v35_v7  ;;  %486 = vmatpush.msra.mxu3 %v35_v7  ;;  %v280_v17 = vld [vmem:[%s670_s6 + $0x8] sm:$0xff]  ;;  %v167_v49 = vld [vmem:[%s669_s4 + $0x18] sm:$0xff]  ;;  %v160_v55 = vld [vmem:[%s671_s3] sm:$0xff] }
   0x7   :  { %456 = vmatmul.msk.f32.vlgmr.msra.gmra.mxu0 %vm66_vm1, %v38_v8  ;;  %459 = vmatmul.msk.f32.vlgmr.msra.gmra.mxu2 %vm66_vm1, %v41_v9  ;;  %v166_v57 = vld [vmem:[%s669_s4 + $0x10] sm:$0xff]  ;;  %v161_v58 = vld [vmem:[%s671_s3 + $0x8] sm:$0xff]  ;;  %v282_v59 = vld [vmem:[%s670_s6 + $0x18] sm:$0xff] }
   0x8   :  { %461 = vmatmul.msk.f32.vlgmr.msra.gmra.mxu1 %vm66_vm1, %v38_v8  ;;  %464 = vmatmul.msk.f32.vlgmr.msra.gmra.mxu3 %vm66_vm1, %v41_v9  ;;  %v162_v60 = vld [vmem:[%s671_s3 + $0x10] sm:$0xff]  ;;  %v279_v61 = vld [vmem:[%s670_s6] sm:$0xff]  ;;  %v163_v62 = vld [vmem:[%s671_s3 + $0x18] sm:$0xff] }
   0x9   :  { %490 = vset.pattern.permute.xlu2 %v491_v0  ;;  %v390_v18 = vld [vmem:[#allocation2] sm:$0x1] }
   0xa   :  { %58 = vperm.xlu0 %488, %v44_v10   ;;  %185 = vperm.xlu2 %490, %v167_v49  }
   0xc   :  { %48 = vperm.xlu1 %489, %v42_v11  }
   0xf   :  { %457 = vmatmul.msk.f32.gmra.mxu0 %vm66_vm1, %v39_v12 }
  0x10   :  { %462 = vmatmul.msk.f32.gmra.mxu1 %vm66_vm1, %v39_v12 }
  0x12   :  { %175 = vperm.xlu0 %488, %v165_v13   ;;  %180 = vperm.xlu2 %490, %v166_v57  }
  0x14   :  { %170 = vperm.xlu1 %489, %v164_v14  }
  0x17   :  { %458 = vmatmul.msk.f32.gmra.mxu0 %vm66_vm1, %v40_v15 }
  0x18   :  { %463 = vmatmul.msk.f32.gmra.mxu1 %vm66_vm1, %v40_v15 }
  0x1a   :  { %295 = vperm.xlu0 %488, %v281_v16   ;;  %300 = vperm.xlu2 %490, %v282_v59  }
  0x1c   :  { %290 = vperm.xlu1 %489, %v280_v17  }
  0x22   :  { %393 = vperm.xlu0 %488, %v390_v18   ;;  %285 = vperm.xlu2 %490, %v279_v61  }
  0x64   :  { %v186_v3 = vpop.permute.xlu2 %185 }
  0x6c   :  { %v181_v6 = vpop.permute.xlu2 %180 }
  0x74   :  { %v64_v21 = vpop.permute.xlu0 %63 }
  0x76   :  { %v54_v22 = vpop.permute.xlu1 %53 }
  0x7c   :  { %v59_v33 = vpop.permute.xlu0 %58 }
  0x7e   :  { %v49_v35 = vpop.permute.xlu1 %48 }
  0x84   :  { %v103_v19 = vpop.f32.mrf.mxu0  ;;  %v176_v8 = vpop.permute.xlu0 %175 }
  0x85   :  { %v132_v20 = vpop.f32.mrf.mxu1  ;;  %v104_v38 = vadd.f32 %v103_v19, %v49_v35 }
  0x86   :  { %v133_v41 = vadd.f32 %v132_v20, %v49_v35  ;;  %v171_v14 = vpop.permute.xlu1 %170 }
  0x87   :  { %v144_v47 = vmul.f32 0.2, %v104_v38 }
  0x88   :  { %v145_v50 = vmul.f32 0.2, %v133_v41 }
  0x89   :  { %v152_v54 = vmax.f32 %v104_v38, %v144_v47  ;;  %v278_v38 = vld [vmem:[%s672_s5 + $0x18] sm:$0xff] }
  0x8a   :  { %v112_v23 = vpop.f32.mrf.mxu2  ;;  %v153_v56 = vmax.f32 %v133_v41, %v145_v50 }
  0x8b   :  { %v113_v24 = vadd.f32 %v112_v23, %v64_v21  ;;  %v141_v25 = vpop.f32.mrf.mxu3 }
  0x8c   :  { %v142_v26 = vadd.f32 %v141_v25, %v64_v21  ;;  %v106_v27 = vpop.f32.mrf.mxu0 }
  0x8d   :  { %v150_v28 = vmul.f32 0.2, %v113_v24  ;;  %v135_v29 = vpop.f32.mrf.mxu1  ;;  %v107_v34 = vadd.f32 %v106_v27, %v54_v22 }
  0x8e   :  { %v151_v30 = vmul.f32 0.2, %v142_v26  ;;  %v136_v36 = vadd.f32 %v135_v29, %v54_v22 }
  0x8f   :  { %v158_v31 = vmax.f32 %v113_v24, %v150_v28  ;;  %v146_v43 = vmul.f32 0.2, %v107_v34 }
  0x90   :  { %v159_v32 = vmax.f32 %v142_v26, %v151_v30  ;;  %v147_v45 = vmul.f32 0.2, %v136_v36 }
  0x91   :  { %213 = vmatpush.msrb.mxu2 %v158_v31  ;;  %v154_v52 = vmax.f32 %v107_v34, %v146_v43  ;;  %v275_v34 = vld [vmem:[%s672_s5] sm:$0xff]  ;;  %v301_v43 = vpop.permute.xlu2 %300 }
  0x92   :  { %242 = vmatpush.msrb.mxu3 %v159_v32  ;;  %v155_v53 = vmax.f32 %v136_v36, %v147_v45  ;;  %v276_v36 = vld [vmem:[%s672_s5 + $0x8] sm:$0xff] }
  0x94   :  { %v109_v37 = vpop.f32.mrf.mxu0 }
  0x95   :  { %v110_v39 = vadd.f32 %v109_v37, %v59_v33  ;;  %v138_v40 = vpop.f32.mrf.mxu1  ;;  %v277_v37 = vld [vmem:[%s672_s5 + $0x10] sm:$0xff] }
  0x96   :  { %v139_v42 = vadd.f32 %v138_v40, %v59_v33 }
  0x97   :  { %v148_v44 = vmul.f32 0.2, %v110_v39 }
  0x98   :  { %v149_v46 = vmul.f32 0.2, %v139_v42 }
  0x99   :  { %v156_v48 = vmax.f32 %v110_v39, %v148_v44 }
  0x9a   :  { %v157_v51 = vmax.f32 %v139_v42, %v149_v46  ;;  %v296_v46 = vpop.permute.xlu0 %295 }
  0x9b   :  { %214 = vmatpush.msrb.mxu2 %v156_v48  ;;  %v291_v48 = vpop.permute.xlu1 %290 }
  0x9c   :  { %243 = vmatpush.msrb.mxu3 %v157_v51 }
  0x9d   :  { %215 = vmatpush.msrb.mxu2 %v154_v52 }
  0x9e   :  { %244 = vmatpush.msrb.mxu3 %v155_v53 }
  0x9f   :  { %216 = vmatpush.msrb.mxu2 %v152_v54  ;;  %v286_v54 = vpop.permute.xlu2 %285 }
  0xa0   :  { %245 = vmatpush.msrb.mxu3 %v153_v56  ;;  %465 = vmatmul.msk.f32.vlgmr.msrb.gmra.mxu2 %vm188_vm2, %v160_v55 }
  0xa1   :  { %469 = vmatmul.msk.f32.vlgmr.msrb.gmra.mxu3 %vm188_vm2, %v160_v55 }
  0xa8   :  { %466 = vmatmul.msk.f32.gmra.mxu2 %vm188_vm2, %v161_v58 }
  0xa9   :  { %470 = vmatmul.msk.f32.gmra.mxu3 %vm188_vm2, %v161_v58 }
  0xb0   :  { %467 = vmatmul.msk.f32.gmra.mxu2 %vm188_vm2, %v162_v60 }
  0xb1   :  { %471 = vmatmul.msk.f32.gmra.mxu3 %vm188_vm2, %v162_v60 }
  0xb8   :  { %468 = vmatmul.msk.f32.gmra.mxu2 %vm188_vm2, %v163_v62 }
  0xb9   :  { %472 = vmatmul.msk.f32.gmra.mxu3 %vm188_vm2, %v163_v62 }
 0x123   :  { %v218_v63 = vpop.f32.mrf.mxu2 }
 0x124   :  { %v247_v0 = vpop.f32.mrf.mxu3  ;;  %v219_v17 = vadd.f32 %v218_v63, %v171_v14 }
 0x125   :  { %v248_v20 = vadd.f32 %v247_v0, %v171_v14  ;;  %v446_v14 = vlaneseq }
 0x126   :  { %v259_v27 = vmul.f32 0.2, %v219_v17 }
 0x127   :  { %v260_v29 = vmul.f32 0.2, %v248_v20  ;;  %vm448_vm4 = vcmp.lt.s32.totalorder %v446_v14, 256 }
 0x128   :  { %v267_v33 = vmax.f32 %v219_v17, %v259_v27 }
 0x129   :  { %v268_v35 = vmax.f32 %v248_v20, %v260_v29 }
 0x12b   :  { %v221_v1 = vpop.f32.mrf.mxu2 }
 0x12c   :  { %v250_v2 = vpop.f32.mrf.mxu3  ;;  %v222_v11 = vadd.f32 %v221_v1, %v176_v8 }
 0x12d   :  { %v251_v15 = vadd.f32 %v250_v2, %v176_v8 }
 0x12e   :  { %v261_v23 = vmul.f32 0.2, %v222_v11 }
 0x12f   :  { %v262_v25 = vmul.f32 0.2, %v251_v15 }
 0x130   :  { %v269_v31 = vmax.f32 %v222_v11, %v261_v23 }
 0x131   :  { %v270_v32 = vmax.f32 %v251_v15, %v262_v25 }
 0x133   :  { %v224_v4 = vpop.f32.mrf.mxu2 }
 0x134   :  { %v253_v5 = vpop.f32.mrf.mxu3  ;;  %v225_v7 = vadd.f32 %v224_v4, %v181_v6 }
 0x135   :  { %v254_v9 = vadd.f32 %v253_v5, %v181_v6 }
 0x136   :  { %v263_v18 = vmul.f32 0.2, %v225_v7 }
 0x137   :  { %v264_v21 = vmul.f32 0.2, %v254_v9 }
 0x138   :  { %v271_v28 = vmax.f32 %v225_v7, %v263_v18 }
 0x139   :  { %v272_v30 = vmax.f32 %v254_v9, %v264_v21 }
 0x13b   :  { %v227_v10 = vpop.f32.mrf.mxu2 }
 0x13c   :  { %v228_v12 = vadd.f32 %v227_v10, %v186_v3  ;;  %v256_v13 = vpop.f32.mrf.mxu3  ;;  %v389_v10 = vld [vmem:[%s673_s7] sm:$0x1] }
 0x13d   :  { %v257_v16 = vadd.f32 %v256_v13, %v186_v3 }
 0x13e   :  { %v265_v19 = vmul.f32 0.2, %v228_v12 }
 0x13f   :  { %v266_v22 = vmul.f32 0.2, %v257_v16 }
 0x140   :  { %v273_v24 = vmax.f32 %v228_v12, %v265_v19  ;;  %v394_v12 = vpop.permute.xlu0 %393 }
 0x141   :  { %v274_v26 = vmax.f32 %v257_v16, %v266_v22  ;;  %v396_v13 = vperm.slane %v394_v12, 0 }
 0x142   :  { %327 = vmatpush.msrb.mxu0 %v273_v24 }
 0x143   :  { %356 = vmatpush.msrb.mxu1 %v274_v26 }
 0x144   :  { %328 = vmatpush.msrb.mxu0 %v271_v28 }
 0x145   :  { %357 = vmatpush.msrb.mxu1 %v272_v30 }
 0x146   :  { %329 = vmatpush.msrb.mxu0 %v269_v31 }
 0x147   :  { %358 = vmatpush.msrb.mxu1 %v270_v32 }
 0x148   :  { %330 = vmatpush.msrb.mxu0 %v267_v33 }
 0x149   :  { %359 = vmatpush.msrb.mxu1 %v268_v35  ;;  %473 = vmatmul.msk.f32.vlgmr.msrb.gmra.mxu0 %vm188_vm2, %v275_v34 }
 0x14a   :  { %477 = vmatmul.msk.f32.vlgmr.msrb.gmra.mxu1 %vm188_vm2, %v275_v34 }
 0x151   :  { %474 = vmatmul.msk.f32.gmra.mxu0 %vm188_vm2, %v276_v36 }
 0x152   :  { %478 = vmatmul.msk.f32.gmra.mxu1 %vm188_vm2, %v276_v36 }
 0x159   :  { %475 = vmatmul.msk.f32.gmra.mxu0 %vm188_vm2, %v277_v37 }
 0x15a   :  { %479 = vmatmul.msk.f32.gmra.mxu1 %vm188_vm2, %v277_v37 }
 0x161   :  { %476 = vmatmul.msk.f32.gmra.mxu0 %vm188_vm2, %v278_v38 }
 0x162   :  { %480 = vmatmul.msk.f32.gmra.mxu1 %vm188_vm2, %v278_v38 }
 0x1c6   :  { %v332_v39 = vpop.f32.mrf.mxu0 }
 0x1c7   :  { %v361_v40 = vpop.f32.mrf.mxu1  ;;  %v333_v57 = vadd.f32 %v332_v39, %v286_v54 }
 0x1c8   :  { %v362_v60 = vadd.f32 %v361_v40, %v286_v54 }
 0x1c9   :  { %v373_v3 = vmul.f32 0.2, %v333_v57 }
 0x1ca   :  { %v374_v5 = vmul.f32 0.2, %v362_v60 }
 0x1cb   :  { %v381_v9 = vmax.f32 %v333_v57, %v373_v3 }
 0x1cc   :  { %v382_v11 = vmax.f32 %v362_v60, %v374_v5 }
 0x1ce   :  { %v335_v41 = vpop.f32.mrf.mxu0 }
 0x1cf   :  { %v364_v42 = vpop.f32.mrf.mxu1  ;;  %v336_v51 = vadd.f32 %v335_v41, %v291_v48 }
 0x1d0   :  { %v365_v55 = vadd.f32 %v364_v42, %v291_v48 }
 0x1d1   :  { %v375_v63 = vmul.f32 0.2, %v336_v51 }
 0x1d2   :  { %v376_v1 = vmul.f32 0.2, %v365_v55 }
 0x1d3   :  { %v383_v7 = vmax.f32 %v336_v51, %v375_v63 }
 0x1d4   :  { %v384_v8 = vmax.f32 %v365_v55, %v376_v1 }
 0x1d6   :  { %v338_v44 = vpop.f32.mrf.mxu0 }
 0x1d7   :  { %v367_v45 = vpop.f32.mrf.mxu1  ;;  %v339_v47 = vadd.f32 %v338_v44, %v296_v46 }
 0x1d8   :  { %v368_v49 = vadd.f32 %v367_v45, %v296_v46 }
 0x1d9   :  { %v377_v58 = vmul.f32 0.2, %v339_v47 }
 0x1da   :  { %v378_v61 = vmul.f32 0.2, %v368_v49 }
 0x1db   :  { %v385_v4 = vmax.f32 %v339_v47, %v377_v58 }
 0x1dc   :  { %v386_v6 = vmax.f32 %v368_v49, %v378_v61 }
 0x1de   :  { %v341_v50 = vpop.f32.mrf.mxu0 }
 0x1df   :  { %v342_v52 = vadd.f32 %v341_v50, %v301_v43  ;;  %v370_v53 = vpop.f32.mrf.mxu1 }
 0x1e0   :  { %v371_v56 = vadd.f32 %v370_v53, %v301_v43 }
 0x1e1   :  { %v379_v59 = vmul.f32 0.2, %v342_v52 }
 0x1e2   :  { %v380_v62 = vmul.f32 0.2, %v371_v56 }
 0x1e3   :  { %v387_v0 = vmax.f32 %v342_v52, %v379_v59 }
 0x1e4   :  { %v388_v2 = vmax.f32 %v371_v56, %v380_v62 }
 0x1e5   :  { %412 = vmatpush.msra.mxu2 %v387_v0 }
 0x1e6   :  { %432 = vmatpush.msra.mxu3 %v388_v2 }
 0x1e7   :  { %413 = vmatpush.msra.mxu2 %v385_v4 }
 0x1e8   :  { %433 = vmatpush.msra.mxu3 %v386_v6 }
 0x1e9   :  { %414 = vmatpush.msra.mxu2 %v383_v7 }
 0x1ea   :  { %434 = vmatpush.msra.mxu3 %v384_v8 }
 0x1eb   :  { %415 = vmatpush.msra.mxu2 %v381_v9 }
 0x1ec   :  { %435 = vmatpush.msra.mxu3 %v382_v11  ;;  %481 = vmatmul.msk.f32.vlgmr.msra.gmra.mxu2 %vm188_vm2, %v389_v10 }
 0x1ed   :  { %482 = vmatmul.msk.f32.vlgmr.msra.gmra.mxu3 %vm188_vm2, %v389_v10 }
 0x26f   :  { %v417_v15 = vpop.f32.mrf.mxu2 }
 0x270   :  { %v437_v16 = vpop.f32.mrf.mxu3  ;;  %v418_v18 = vadd.f32 %v417_v15, %v396_v13 }
 0x271   :  { %v438_v17 = vadd.f32 %v437_v16, %v396_v13 }
 0x273   :  { %v442_v19 = vrot.slane %v438_v17, 7 }
 0x275   :  { %v444_v20 = vsel %vm443_vm3, %v418_v18, %v442_v19 }
 0x276   :  { %450 = vst.msk [vmem:[%s674_s9] sm:$0x3] %vm448_vm4, %v444_v20 }

</bundles_post_ra>
